<compile_context>
chip_gen: v7x
topology: tpu7x:2x2x1
jax: 0.10.0
libtpu: 0.0.40
codegen_flags: <defaults>
</compile_context>

<pallas_src>
import functools
import numpy as np
import jax
import jax.numpy as jnp
from jax.experimental import pallas as pl
from jax.experimental.pallas import tpu as pltpu

# ---- Generator hyper-parameters (module defaults) --------------------------
M = 200            # self.m
DZ = 20            # self.dz
CH = 96            # ch  (uniform_rep(96, SO(2)) has total dim 96)
CH_PAD = 128       # lane-padded hidden width used inside the kernel
NUM_LAYERS = 3
NOISE_SCALE = 1.0
THRESHOLD = 0.1

D_B = M            # brightness features
D_C = 2 * M        # sorted (x, y) coordinates
D_Z = 2 * DZ       # noise (cos, sin) pairs
D_IN = D_B + D_C + D_Z          # 640 = dim(rep_in), exact multiple of 128
D_OUT = 4                       # dim(rep_out) = 2*T(1)(SO(2)) = 4
D_OUT_PAD = 8                   # sublane-padded output rows (rows 4..7 == 0)


def _round_up(x, n):
    return ((x + n - 1) // n) * n


def _bf16_act_ok():
    """Run swish in bf16 only where the VPU/EUP support bf16 (v6e / v7x)."""
    try:
        kind = jax.devices()[0].device_kind.lower()
    except Exception:
        return False
    return not any(t in kind for t in ("v2", "v3", "v4", "v5"))


# ---- Pallas kernel: fused MLP (3 hidden blocks + output head) ---------------
def _mlp_kernel(x_ref, w1_ref, b1_ref, w2_ref, b2_ref, w3_ref, b3_ref,
                w4t_ref, b4t_ref, out_ref, *, act_dtype):
    # TODO(synk): the real EMLPBlock uses an equivariant-basis-projected Linear,
    # a BiLinear term and a GatedNonlinearity; here each block is approximated
    # by a dense Linear + swish (the scalar-channel nonlinearity of EMLP).

    def block(h, w_ref, b_ref):
        h = jnp.dot(h, w_ref[...], preferred_element_type=jnp.float32) + b_ref[...]
        h = h.astype(act_dtype)
        h = h * jax.nn.sigmoid(h)              # swish
        return h.astype(jnp.bfloat16)          # next matmul consumes bf16

    h = block(x_ref[...], w1_ref, b1_ref)      # (Bm, 640) @ (640, 128), K=640 fused
    h = block(h, w2_ref, b2_ref)               # (Bm, 128) @ (128, 128)
    h = block(h, w3_ref, b3_ref)               # (Bm, 128) @ (128, 128)

    # Output head emitted TRANSPOSED: batch on the lane axis so the store is
    # lane-dense and unmasked ((8, Bm) f32 block instead of a 128-lane-padded
    # (Bm, 4) block).  The (Bm,128)->(128,Bm) transpose of a tile-aligned bf16
    # activation rides the otherwise idle XLU slot.
    ot = jnp.dot(w4t_ref[...], h.T, preferred_element_type=jnp.float32)
    out_ref[...] = ot + b4t_ref[...]


def _tile_batch(B, bm_max=2048):
    """Pick (rows per grid step, padded batch)."""
    B_pad = _round_up(max(B, 1), 128)
    if B_pad <= 128:
        return B_pad, B_pad                    # too small to split usefully
    # >= 2 grid steps so both v7x TensorCores get work under "parallel";
    # keep each step lane/MXU aligned (256 when large enough) and <= bm_max.
    align = 256 if B_pad >= 512 else 128
    Bm = min(bm_max, _round_up(pl.cdiv(B_pad, 2), align))
    B_pad = _round_up(B_pad, Bm)
    return Bm, B_pad


def mlp_pallas(x, kernel_params, bm_max=2048):
    """x: (B, 640) bf16; kernel_params padded -> transposed (D_OUT, B) f32."""
    B = x.shape[0]
    Bm, B_pad = _tile_batch(B, bm_max)
    if B_pad != B:
        x = jnp.pad(x, ((0, B_pad - B), (0, 0)))
    grid = (B_pad // Bm,)

    x_spec = pl.BlockSpec((Bm, D_IN), lambda i: (i, 0))
    # Weights/biases use a constant index_map: the pipeline skips the re-DMA
    # when the block index is unchanged, so they stay VMEM-resident across the
    # grid.  (~230 KB total — double-buffer overhead is negligible.)
    const_map = lambda i: (0, 0)
    param_specs = [pl.BlockSpec(p.shape, const_map) for p in kernel_params]
    out_spec = pl.BlockSpec((D_OUT_PAD, Bm), lambda i: (0, i))

    param_bytes = sum(int(p.size) * p.dtype.itemsize for p in kernel_params)
    flops = 2 * B_pad * (D_IN * CH_PAD + 2 * CH_PAD * CH_PAD + CH_PAD * D_OUT_PAD)
    transcendentals = 3 * B_pad * CH_PAD
    bytes_accessed = (B_pad * D_IN * 2            # bf16 fused input stream
                      + D_OUT_PAD * B_pad * 4     # f32 transposed output
                      + param_bytes)

    # Explicit scoped-VMEM budget: double-buffered x/out tiles + params +
    # activation scratch, with margin; capped well under v7x's 64 MiB physical.
    vmem_est = (2 * (Bm * D_IN * 2 + D_OUT_PAD * Bm * 4 + param_bytes)
                + 8 * Bm * CH_PAD * 4)
    vmem_limit = int(min(56 * 1024 * 1024, max(24 * 1024 * 1024, 2 * vmem_est)))

    act_dtype = jnp.bfloat16 if _bf16_act_ok() else jnp.float32

    out = pl.pallas_call(
        functools.partial(_mlp_kernel, act_dtype=act_dtype),
        out_shape=jax.ShapeDtypeStruct((D_OUT_PAD, B_pad), jnp.float32),
        grid=grid,
        in_specs=[x_spec] + param_specs,
        out_specs=out_spec,
        compiler_params=pltpu.CompilerParams(
            dimension_semantics=("parallel",),
            vmem_limit_bytes=vmem_limit),
        cost_estimate=pl.CostEstimate(
            flops=flops,
            transcendentals=transcendentals,
            bytes_accessed=bytes_accessed),
    )(x, *kernel_params)
    return out[:D_OUT, :B]                     # (4, B) f32


# ---- Parameter padding / dtype prep (done once, outside the kernel) ---------
def prepare_params(params):
    """Pad hidden width 96->128 with zeros, cast weights to bf16, and store the
    output head transposed + output-padded 4->8 (padded rows/bias are exact
    zeros, so padded channels/rows stay zero through every layer)."""
    w1, b1, w2, b2, w3, b3, w4, b4 = params
    pc = CH_PAD - CH
    po = D_OUT_PAD - D_OUT
    w1p = jnp.pad(w1, ((0, 0), (0, pc))).astype(jnp.bfloat16)    # (640, 128)
    w2p = jnp.pad(w2, ((0, pc), (0, pc))).astype(jnp.bfloat16)   # (128, 128)
    w3p = jnp.pad(w3, ((0, pc), (0, pc))).astype(jnp.bfloat16)   # (128, 128)
    b1p = jnp.pad(b1, ((0, 0), (0, pc)))                         # (1, 128) f32
    b2p = jnp.pad(b2, ((0, 0), (0, pc)))
    b3p = jnp.pad(b3, ((0, 0), (0, pc)))
    w4t = jnp.pad(w4, ((0, pc), (0, po))).T.astype(jnp.bfloat16)  # (8, 128)
    b4t = jnp.pad(b4, ((0, 0), (0, po))).reshape(D_OUT_PAD, 1)    # (8, 1) f32
    return [w1p, b1p, w2p, b2p, w3p, b3p, w4t, b4t]


# ---- Plain-JAX glue: Generator preprocessing --------------------------------
def get_coords():
    idx1 = np.array(list(range(-14, 0)) + list(range(1, 15)), dtype=np.float32)
    idx1 = np.broadcast_to(idx1[None, :], (28, 28))
    idx2 = np.array(list(range(14, 0, -1)) + list(range(-1, -15, -1)), dtype=np.float32)
    idx2 = np.broadcast_to(idx2[:, None], (28, 28))
    return jnp.asarray(np.stack([idx1, idx2], axis=0))   # (2, 28, 28)


def get_vec(images):
    B = images.shape[0]
    img = images[:, 0, :, :]                              # (B, 28, 28)
    coords = get_coords()                                 # (2, 28, 28)
    x = jnp.concatenate(
        [jnp.broadcast_to(coords[None], (B, 2, 28, 28)), img[:, None]], axis=1
    )                                                     # (B, 3, 28, 28)
    x = jnp.transpose(x, (0, 2, 3, 1)).reshape(B, 28 * 28, 3)
    # torch.sort(descending=True) on brightness + perm-matmul == gather by argsort
    # (jnp.argsort is stable; torch.sort is not — ties may order differently).
    order = jnp.argsort(-x[:, :, 2], axis=-1)
    sort_x = jnp.take_along_axis(x, order[:, :, None], axis=1)
    v = sort_x[:, :M, :]
    mask = v[:, :, 2] < THRESHOLD                         # zero whole row below threshold
    v = jnp.where(mask[:, :, None], 0.0, v)
    return v                                              # (B, M, 3)


def sample_noise(key, B):
    angles = jax.random.uniform(key, (B, DZ), minval=0.0, maxval=2.0 * np.pi)
    Z = jnp.stack([jnp.cos(angles), jnp.sin(angles)], axis=1)   # (B, 2, DZ)
    return Z * NOISE_SCALE


def generator_forward(params, images, noise_key):
    B = images.shape[0]
    # Cast to bf16 immediately after the threshold mask so all downstream glue
    # (slices / reshapes / concat) moves half the bytes.
    v = get_vec(images).astype(jnp.bfloat16)               # (B, M, 3)
    Z = sample_noise(noise_key, B).astype(jnp.bfloat16)    # (B, 2, DZ)
    # Fused 640-wide feature row, same layout as the torch reference:
    # [brightness (m) | (x,y) coords (2m) | (cos,sin) noise (2*dz)].
    feats = jnp.concatenate(
        [v[:, :, 2],
         v[:, :, :2].reshape(B, D_C),
         jnp.transpose(Z, (0, 2, 1)).reshape(B, D_Z)],
        axis=1)                                            # (B, 640) bf16
    kernel_params = prepare_params(params)
    out_t = mlp_pallas(feats, kernel_params)               # (4, B) f32
    out = out_t.T.reshape(B, 2, 2)
    out = jnp.swapaxes(out, -1, -2)                        # (B, 2, 2)
    return out


# ---- Deterministic parameter init -------------------------------------------
def init_params(key):
    dims = [D_IN] + [CH] * NUM_LAYERS + [D_OUT]
    params = []
    for din, dout in zip(dims[:-1], dims[1:]):
        key, wk = jax.random.split(key)
        w = (jax.random.normal(wk, (din, dout), jnp.float32)
             / jnp.sqrt(jnp.float32(din)))
        b = jnp.zeros((1, dout), jnp.float32)
        params += [w, b]
    return params


if __name__ == "__main__":
    root = jax.random.PRNGKey(0)
    pkey, ikey, nkey = jax.random.split(root, 3)

    params = init_params(pkey)
    # Synthetic "MNIST-like" images in [0, 1], NCHW.
    images = jax.random.uniform(ikey, (2, 1, 28, 28), dtype=jnp.float32)

    fwd = jax.jit(generator_forward)
    out = fwd(params, images, nkey)
    out = jax.block_until_ready(out)
    assert out.shape == (2, 2, 2) and out.dtype == jnp.float32
    print("KERNEL_OK")
</pallas_src>

<mosaic_0001>
module attributes {stable_mosaic.version = 11 : i64} {
  func.func private @main(%arg0: i32) attributes {dimension_semantics = [#tpu.dimension_semantics<core_parallel>], iteration_bounds = array<i64: 2>, tpu.core_type = #tpu.core_type<sc_scalar_subcore>, window_params = []} {
    return
  }
}

module attributes {stable_mosaic.version = 11 : i64} {
  func.func private @main(%arg0: i32) attributes {dimension_semantics = [#tpu.dimension_semantics<core_parallel>], iteration_bounds = array<i64: 2>, tpu.core_type = #tpu.core_type<sc_scalar_subcore>, window_params = []} {
    return
  }
}

module attributes {stable_mosaic.version = 11 : i64} {
  func.func @_mlp_kernel(%arg0: i32, %arg1: memref<128x640xbf16, #tpu.memory_space<vmem>>, %arg2: memref<640x128xbf16, #tpu.memory_space<vmem>>, %arg3: memref<1x128xf32, #tpu.memory_space<vmem>>, %arg4: memref<128x128xbf16, #tpu.memory_space<vmem>>, %arg5: memref<1x128xf32, #tpu.memory_space<vmem>>, %arg6: memref<128x128xbf16, #tpu.memory_space<vmem>>, %arg7: memref<1x128xf32, #tpu.memory_space<vmem>>, %arg8: memref<8x128xbf16, #tpu.memory_space<vmem>>, %arg9: memref<8x1xf32, #tpu.memory_space<vmem>>, %arg10: memref<8x128xf32, #tpu.memory_space<vmem>>) attributes {dimension_semantics = [#tpu.dimension_semantics<parallel>], iteration_bounds = array<i64: 1>, scalar_prefetch = 0 : i64, scratch_operands = 0 : i64, tpu.core_type = #tpu.core_type<tc>, window_params = [{transform_indices = @transform_0, window_bounds = array<i64: 128, 640>}, {pipeline_mode = #tpu.pipeline_mode<synchronous>, transform_indices = @transform_1, window_bounds = array<i64: 640, 128>}, {pipeline_mode = #tpu.pipeline_mode<synchronous>, transform_indices = @transform_2, window_bounds = array<i64: 1, 128>}, {pipeline_mode = #tpu.pipeline_mode<synchronous>, transform_indices = @transform_3, window_bounds = array<i64: 128, 128>}, {pipeline_mode = #tpu.pipeline_mode<synchronous>, transform_indices = @transform_4, window_bounds = array<i64: 1, 128>}, {pipeline_mode = #tpu.pipeline_mode<synchronous>, transform_indices = @transform_5, window_bounds = array<i64: 128, 128>}, {pipeline_mode = #tpu.pipeline_mode<synchronous>, transform_indices = @transform_6, window_bounds = array<i64: 1, 128>}, {pipeline_mode = #tpu.pipeline_mode<synchronous>, transform_indices = @transform_7, window_bounds = array<i64: 8, 128>}, {pipeline_mode = #tpu.pipeline_mode<synchronous>, transform_indices = @transform_8, window_bounds = array<i64: 8, 1>}, {transform_indices = @transform_9, window_bounds = array<i64: 8, 128>}]} {
    %c0 = arith.constant 0 : index
    %c0_0 = arith.constant 0 : index
    %0 = vector.load %arg1[%c0, %c0_0] : memref<128x640xbf16, #tpu.memory_space<vmem>>, vector<128x640xbf16>
    %c0_1 = arith.constant 0 : index
    %c0_2 = arith.constant 0 : index
    %1 = vector.load %arg2[%c0_1, %c0_2] : memref<640x128xbf16, #tpu.memory_space<vmem>>, vector<640x128xbf16>
    %cst = arith.constant dense<0.000000e+00> : vector<128x128xf32>
    %2 = tpu.matmul %0, %1, %cst {dimension_numbers = #tpu.dot_dimension_numbers<[1], [0], [0], [1], [0, 0, 1, 1], [], []>} : vector<128x640xbf16>, vector<640x128xbf16>, vector<128x128xf32> -> vector<128x128xf32>
    %c0_3 = arith.constant 0 : index
    %c0_4 = arith.constant 0 : index
    %3 = vector.load %arg3[%c0_3, %c0_4] : memref<1x128xf32, #tpu.memory_space<vmem>>, vector<1x128xf32>
    %4 = vector.broadcast %3 : vector<1x128xf32> to vector<128x128xf32>
    %5 = arith.addf %2, %4 : vector<128x128xf32>
    %6 = arith.truncf %5 : vector<128x128xf32> to vector<128x128xbf16>
    %7 = arith.negf %6 : vector<128x128xbf16>
    %8 = math.exp %7 : vector<128x128xbf16>
    %cst_5 = arith.constant 1.000000e+00 : bf16
    %9 = vector.broadcast %cst_5 : bf16 to vector<128x128xbf16>
    %10 = arith.addf %9, %8 : vector<128x128xbf16>
    %11 = arith.divf %9, %10 : vector<128x128xbf16>
    %12 = arith.mulf %6, %11 : vector<128x128xbf16>
    %c0_6 = arith.constant 0 : index
    %c0_7 = arith.constant 0 : index
    %13 = vector.load %arg4[%c0_6, %c0_7] : memref<128x128xbf16, #tpu.memory_space<vmem>>, vector<128x128xbf16>
    %cst_8 = arith.constant dense<0.000000e+00> : vector<128x128xf32>
    %14 = tpu.matmul %12, %13, %cst_8 {dimension_numbers = #tpu.dot_dimension_numbers<[1], [0], [0], [1], [0, 0, 1, 1], [], []>} : vector<128x128xbf16>, vector<128x128xbf16>, vector<128x128xf32> -> vector<128x128xf32>
    %c0_9 = arith.constant 0 : index
    %c0_10 = arith.constant 0 : index
    %15 = vector.load %arg5[%c0_9, %c0_10] : memref<1x128xf32, #tpu.memory_space<vmem>>, vector<1x128xf32>
    %16 = vector.broadcast %15 : vector<1x128xf32> to vector<128x128xf32>
    %17 = arith.addf %14, %16 : vector<128x128xf32>
    %18 = arith.truncf %17 : vector<128x128xf32> to vector<128x128xbf16>
    %19 = arith.negf %18 : vector<128x128xbf16>
    %20 = math.exp %19 : vector<128x128xbf16>
    %cst_11 = arith.constant 1.000000e+00 : bf16
    %21 = vector.broadcast %cst_11 : bf16 to vector<128x128xbf16>
    %22 = arith.addf %21, %20 : vector<128x128xbf16>
    %23 = arith.divf %21, %22 : vector<128x128xbf16>
    %24 = arith.mulf %18, %23 : vector<128x128xbf16>
    %c0_12 = arith.constant 0 : index
    %c0_13 = arith.constant 0 : index
    %25 = vector.load %arg6[%c0_12, %c0_13] : memref<128x128xbf16, #tpu.memory_space<vmem>>, vector<128x128xbf16>
    %cst_14 = arith.constant dense<0.000000e+00> : vector<128x128xf32>
    %26 = tpu.matmul %24, %25, %cst_14 {dimension_numbers = #tpu.dot_dimension_numbers<[1], [0], [0], [1], [0, 0, 1, 1], [], []>} : vector<128x128xbf16>, vector<128x128xbf16>, vector<128x128xf32> -> vector<128x128xf32>
    %c0_15 = arith.constant 0 : index
    %c0_16 = arith.constant 0 : index
    %27 = vector.load %arg7[%c0_15, %c0_16] : memref<1x128xf32, #tpu.memory_space<vmem>>, vector<1x128xf32>
    %28 = vector.broadcast %27 : vector<1x128xf32> to vector<128x128xf32>
    %29 = arith.addf %26, %28 : vector<128x128xf32>
    %30 = arith.truncf %29 : vector<128x128xf32> to vector<128x128xbf16>
    %31 = arith.negf %30 : vector<128x128xbf16>
    %32 = math.exp %31 : vector<128x128xbf16>
    %cst_17 = arith.constant 1.000000e+00 : bf16
    %33 = vector.broadcast %cst_17 : bf16 to vector<128x128xbf16>
    %34 = arith.addf %33, %32 : vector<128x128xbf16>
    %35 = arith.divf %33, %34 : vector<128x128xbf16>
    %36 = arith.mulf %30, %35 : vector<128x128xbf16>
    %c0_18 = arith.constant 0 : index
    %c0_19 = arith.constant 0 : index
    %37 = vector.load %arg8[%c0_18, %c0_19] : memref<8x128xbf16, #tpu.memory_space<vmem>>, vector<8x128xbf16>
    %38 = tpu.transpose %36, [1, 0] : vector<128x128xbf16> -> vector<128x128xbf16>
    %cst_20 = arith.constant dense<0.000000e+00> : vector<8x128xf32>
    %39 = tpu.matmul %37, %38, %cst_20 {dimension_numbers = #tpu.dot_dimension_numbers<[1], [0], [0], [1], [0, 0, 1, 1], [], []>} : vector<8x128xbf16>, vector<128x128xbf16>, vector<8x128xf32> -> vector<8x128xf32>
    %c0_21 = arith.constant 0 : index
    %c0_22 = arith.constant 0 : index
    %40 = vector.load %arg9[%c0_21, %c0_22] : memref<8x1xf32, #tpu.memory_space<vmem>>, vector<8x1xf32>
    %41 = vector.broadcast %40 : vector<8x1xf32> to vector<8x128xf32>
    %42 = arith.addf %39, %41 : vector<8x128xf32>
    %c0_23 = arith.constant 0 : index
    %c0_24 = arith.constant 0 : index
    %43 = vector.load %arg10[%c0_23, %c0_24] : memref<8x128xf32, #tpu.memory_space<vmem>>, vector<8x128xf32>
    tpu.vector_store %arg10[%c0_23, %c0_24], %42 {strides = array<i32>} : memref<8x128xf32, #tpu.memory_space<vmem>>, vector<8x128xf32>,
    return
  }
  func.func @transform_0(%arg0: i32) -> (i32, i32) {
    %c0_i32 = arith.constant 0 : i32
    %c0_i32_0 = arith.constant 0 : i32
    return %arg0, %c0_i32 : i32, i32
  }
  func.func @transform_1(%arg0: i32) -> (i32, i32) {
    %c0_i32 = arith.constant 0 : i32
    %c0_i32_0 = arith.constant 0 : i32
    %c0_i32_1 = arith.constant 0 : i32
    return %c0_i32, %c0_i32_0 : i32, i32
  }
  func.func @transform_2(%arg0: i32) -> (i32, i32) {
    %c0_i32 = arith.constant 0 : i32
    %c0_i32_0 = arith.constant 0 : i32
    %c0_i32_1 = arith.constant 0 : i32
    return %c0_i32, %c0_i32_0 : i32, i32
  }
  func.func @transform_3(%arg0: i32) -> (i32, i32) {
    %c0_i32 = arith.constant 0 : i32
    %c0_i32_0 = arith.constant 0 : i32
    %c0_i32_1 = arith.constant 0 : i32
    return %c0_i32, %c0_i32_0 : i32, i32
  }
  func.func @transform_4(%arg0: i32) -> (i32, i32) {
    %c0_i32 = arith.constant 0 : i32
    %c0_i32_0 = arith.constant 0 : i32
    %c0_i32_1 = arith.constant 0 : i32
    return %c0_i32, %c0_i32_0 : i32, i32
  }
  func.func @transform_5(%arg0: i32) -> (i32, i32) {
    %c0_i32 = arith.constant 0 : i32
    %c0_i32_0 = arith.constant 0 : i32
    %c0_i32_1 = arith.constant 0 : i32
    return %c0_i32, %c0_i32_0 : i32, i32
  }
  func.func @transform_6(%arg0: i32) -> (i32, i32) {
    %c0_i32 = arith.constant 0 : i32
    %c0_i32_0 = arith.constant 0 : i32
    %c0_i32_1 = arith.constant 0 : i32
    return %c0_i32, %c0_i32_0 : i32, i32
  }
  func.func @transform_7(%arg0: i32) -> (i32, i32) {
    %c0_i32 = arith.constant 0 : i32
    %c0_i32_0 = arith.constant 0 : i32
    %c0_i32_1 = arith.constant 0 : i32
    return %c0_i32, %c0_i32_0 : i32, i32
  }
  func.func @transform_8(%arg0: i32) -> (i32, i32) {
    %c0_i32 = arith.constant 0 : i32
    %c0_i32_0 = arith.constant 0 : i32
    %c0_i32_1 = arith.constant 0 : i32
    return %c0_i32, %c0_i32_0 : i32, i32
  }
  func.func @transform_9(%arg0: i32) -> (i32, i32) {
    %c0_i32 = arith.constant 0 : i32
    %c0_i32_0 = arith.constant 0 : i32
    return %c0_i32, %arg0 : i32, i32
  }
}

</mosaic_0001>

<bundles_post_ra>
// kernel: generator_forward.1
= control target key start
LH: loop header
LB: loop body
LE: loop exit
PB: predicated region body
PF: predicated region fallthrough
CT: control target
= control target key end

     0   :  { %vm2149_vm0 = vmmov 0   ;;  %s2621_s1 = inlined_call_operand.vmem [shape: bf16[640,128], index: 1, kind: input, shape index: {}]   ;;  %s2622_s0 = inlined_call_operand.vmem [shape: bf16[128,640], index: 0, kind: input, shape index: {}]   ;;  %s2623_s3 = inlined_call_operand.vmem [shape: bf16[128,128], index: 3, kind: input, shape index: {}]   ;;  %s2624_s2 = inlined_call_operand.vmem [shape: f32[1,128], index: 2, kind: input, shape index: {}]   ;;  %s2625_s5 = inlined_call_operand.vmem [shape: bf16[128,128], index: 5, kind: input, shape index: {}]   ;;  %s2626_s4 = inlined_call_operand.vmem [shape: f32[1,128], index: 4, kind: input, shape index: {}]   ;;  %s2627_s8 = inlined_call_operand.vmem [shape: f32[8,1], index: 8, kind: input, shape index: {}]   ;;  %s2628_s6 = inlined_call_operand.vmem [shape: f32[1,128], index: 6, kind: input, shape index: {}]   ;;  %s2629_s7 = inlined_call_operand.vmem [shape: bf16[8,128], index: 7, kind: input, shape index: {}]   ;;  %s2630_s9 = inlined_call_operand.vmem [shape: f32[8,128], index: 9, kind: output, shape index: {}]  }
   0x1   :  { %v1940_v0 = vld [vmem:[%s2621_s1 + $0x40] sm:$0xff]   ;;  %v1944_v4 = vld [vmem:[%s2621_s1 + $0x48] sm:$0xff]   ;;  %v1948_v8 = vld [vmem:[%s2621_s1 + $0x50] sm:$0xff]  }
   0x2   :  { %v1941_v1 = vld [vmem:[%s2621_s1] sm:$0xff]   ;;  %1635 = vmatprep.subr.bf16.mxu0 %v1940_v0  ;;  %v1945_v5 = vld [vmem:[%s2621_s1 + $0x8] sm:$0xff]   ;;  %v1949_v9 = vld [vmem:[%s2621_s1 + $0x10] sm:$0xff]  }
   0x3   :  { %v1942_v2 = vld [vmem:[%s2621_s1 + $0xc0] sm:$0xff]   ;;  %1636 = vmatpush3.bf16.msra.mxu0 %v1941_v1  ;;  %v1946_v6 = vld [vmem:[%s2621_s1 + $0xc8] sm:$0xff]   ;;  %v1950_v10 = vld [vmem:[%s2621_s1 + $0xd0] sm:$0xff]  }
   0x4   :  { %v1943_v3 = vld [vmem:[%s2621_s1 + $0x80] sm:$0xff]   ;;  %1699 = vmatprep.subr.bf16.mxu1 %v1942_v2  ;;  %1637 = vmatprep.subr.bf16.mxu0 %v1944_v4  ;;  %v1947_v7 = vld [vmem:[%s2621_s1 + $0x88] sm:$0xff]   ;;  %v1951_v11 = vld [vmem:[%s2621_s1 + $0x90] sm:$0xff]  }
   0x5   :  { %1700 = vmatpush3.bf16.msra.mxu1 %v1943_v3  ;;  %v1952_v12 = vld [vmem:[%s2621_s1 + $0x58] sm:$0xff]   ;;  %v1956_v16 = vld [vmem:[%s2621_s1 + $0x60] sm:$0xff]   ;;  %v1960_v20 = vld [vmem:[%s2621_s1 + $0x68] sm:$0xff]  }
   0x6   :  { %1701 = vmatprep.subr.bf16.mxu1 %v1946_v6  ;;  %v1953_v13 = vld [vmem:[%s2621_s1 + $0x18] sm:$0xff]   ;;  %v1957_v17 = vld [vmem:[%s2621_s1 + $0x20] sm:$0xff]   ;;  %v1961_v21 = vld [vmem:[%s2621_s1 + $0x28] sm:$0xff]  }
   0x7   :  { %1638 = vmatpush3.bf16.msra.mxu0 %v1945_v5  ;;  %v1954_v14 = vld [vmem:[%s2621_s1 + $0xd8] sm:$0xff]   ;;  %v1958_v18 = vld [vmem:[%s2621_s1 + $0xe0] sm:$0xff]   ;;  %v1962_v22 = vld [vmem:[%s2621_s1 + $0xe8] sm:$0xff]  }
   0x8   :  { %1639 = vmatprep.subr.bf16.mxu0 %v1948_v8  ;;  %v1955_v15 = vld [vmem:[%s2621_s1 + $0x98] sm:$0xff]   ;;  %v1959_v19 = vld [vmem:[%s2621_s1 + $0xa0] sm:$0xff]   ;;  %v1963_v23 = vld [vmem:[%s2621_s1 + $0xa8] sm:$0xff]  }
   0x9   :  { %1702 = vmatpush3.bf16.msra.mxu1 %v1947_v7  ;;  %v1964_v24 = vld [vmem:[%s2621_s1 + $0x70] sm:$0xff]   ;;  %v1968_v28 = vld [vmem:[%s2621_s1 + $0x78] sm:$0xff]   ;;  %v1975_v34 = vld [vmem:[%s2621_s1 + $0x100] sm:$0xff]  }
   0xa   :  { %1703 = vmatprep.subr.bf16.mxu1 %v1950_v10  ;;  %v1965_v25 = vld [vmem:[%s2621_s1 + $0x30] sm:$0xff]   ;;  %v1969_v29 = vld [vmem:[%s2621_s1 + $0x38] sm:$0xff]   ;;  %v1978_v36 = vld [vmem:[%s2622_s0 + $0xc] ss:$20 sps:$4 sm:$0xff]  }
   0xb   :  { %1640 = vmatpush3.bf16.msra.mxu0 %v1949_v9  ;;  %v1966_v26 = vld [vmem:[%s2621_s1 + $0xf0] sm:$0xff]   ;;  %v1970_v30 = vld [vmem:[%s2621_s1 + $0xf8] sm:$0xff]   ;;  %v1979_v37 = vld [vmem:[%s2622_s0 + $0x2c] ss:$20 sps:$4 sm:$0xff]   ;;  %746 = vmatprep.mubr.bf16.mxu1 %v1978_v36 }
   0xc   :  { %1641 = vmatprep.subr.bf16.mxu0 %v1952_v12  ;;  %v1967_v27 = vld [vmem:[%s2621_s1 + $0xb0] sm:$0xff]   ;;  %v1973_v32 = vld [vmem:[%s2622_s0 + $0x4] ss:$20 sps:$4 sm:$0xff]   ;;  %v1976_v35 = vld [vmem:[%s2622_s0 + $0x8] ss:$20 sps:$4 sm:$0xff]  }
   0xd   :  { %1704 = vmatpush3.bf16.msra.mxu1 %v1951_v11  ;;  %v1971_v31 = vld [vmem:[%s2622_s0] ss:$20 sps:$4 sm:$0xff]   ;;  %v1974_v33 = vld [vmem:[%s2621_s1 + $0xb8] sm:$0xff]   ;;  %649 = vmatprep.mubr.bf16.mxu0 %v1973_v32  ;;  %v1982_v38 = vld [vmem:[%s2621_s1 + $0x108] sm:$0xff]  }
   0xe   :  { %1705 = vmatprep.subr.bf16.mxu1 %v1954_v14  ;;  %v1983_v39 = vld [vmem:[%s2622_s0 + $0x34] ss:$20 sps:$4 sm:$0xff]   ;;  %v1985_v43 = vld [vmem:[%s2622_s0 + $0x30] ss:$20 sps:$4 sm:$0xff]   ;;  %v1996_v45 = vld [vmem:[%s2621_s1 + $0x118] sm:$0xff]  }
   0xf   :  { %1642 = vmatpush3.bf16.msra.mxu0 %v1953_v13  ;;  %v1981_v40 = vld [vmem:[%s2622_s0 + $0x28] ss:$20 sps:$4 sm:$0xff]   ;;  %v1989_v42 = vld [vmem:[%s2621_s1 + $0x110] sm:$0xff]   ;;  %v2003_v48 = vld [vmem:[%s2621_s1 + $0x120] sm:$0xff]  }
  0x10   :  { %1643 = vmatprep.subr.bf16.mxu0 %v1956_v16  ;;  %v1986_v41 = vld [vmem:[%s2622_s0 + $0x54] ss:$20 sps:$4 sm:$0xff]   ;;  %v1990_v44 = vld [vmem:[%s2622_s0 + $0x5c] ss:$20 sps:$4 sm:$0xff]   ;;  %v1992_v49 = vld [vmem:[%s2622_s0 + $0x58] ss:$20 sps:$4 sm:$0xff]  }
  0x11   :  { %1706 = vmatpush3.bf16.msra.mxu1 %v1955_v15  ;;  %v1988_v46 = vld [vmem:[%s2622_s0 + $0x50] ss:$20 sps:$4 sm:$0xff]   ;;  %v2010_v51 = vld [vmem:[%s2621_s1 + $0x128] sm:$0xff]   ;;  %v1999_v55 = vld [vmem:[%s2622_s0 + $0x80] ss:$20 sps:$4 sm:$0xff]  }
  0x12   :  { %1707 = vmatprep.subr.bf16.mxu1 %v1958_v18  ;;  %v1993_v47 = vld [vmem:[%s2622_s0 + $0x7c] ss:$20 sps:$4 sm:$0xff]   ;;  %v1997_v50 = vld [vmem:[%s2622_s0 + $0x84] ss:$20 sps:$4 sm:$0xff]   ;;  %v2004_v56 = vld [vmem:[%s2622_s0 + $0xac] ss:$20 sps:$4 sm:$0xff]  }
  0x13   :  { %1644 = vmatpush3.bf16.msra.mxu0 %v1957_v17  ;;  %v1995_v52 = vld [vmem:[%s2622_s0 + $0x78] ss:$20 sps:$4 sm:$0xff]   ;;  %v2017_v54 = vld [vmem:[%s2621_s1 + $0x130] sm:$0xff]   ;;  %v2006_v60 = vld [vmem:[%s2622_s0 + $0xa8] ss:$20 sps:$4 sm:$0xff]  }
  0x14   :  { %1645 = vmatprep.subr.bf16.mxu0 %v1960_v20  ;;  %v2000_v53 = vld [vmem:[%s2622_s0 + $0xa4] ss:$20 sps:$4 sm:$0xff]   ;;  %v2002_v58 = vld [vmem:[%s2622_s0 + $0xa0] ss:$20 sps:$4 sm:$0xff]   ;;  %v2009_v62 = vld [vmem:[%s2622_s0 + $0xc8] ss:$20 sps:$4 sm:$0xff]  }
  0x15   :  { %1708 = vmatpush3.bf16.msra.mxu1 %v1959_v19  ;;  %v2024_v57 = vld [vmem:[%s2621_s1 + $0x138] sm:$0xff]   ;;  %v2007_v59 = vld [vmem:[%s2622_s0 + $0xcc] ss:$20 sps:$4 sm:$0xff]   ;;  %v2011_v61 = vld [vmem:[%s2622_s0 + $0xd4] ss:$20 sps:$4 sm:$0xff]  }
  0x16   :  { %1709 = vmatprep.subr.bf16.mxu1 %v1962_v22  ;;  %v2014_v63 = vld [vmem:[%s2622_s0 + $0xf4] ss:$20 sps:$4 sm:$0xff]   ;;  %v2013_v0 = vld [vmem:[%s2622_s0 + $0xd0] ss:$20 sps:$4 sm:$0xff]   ;;  %v2020_v4 = vld [vmem:[%s2622_s0 + $0xf8] ss:$20 sps:$4 sm:$0xff]  }
  0x17   :  { %1646 = vmatpush3.bf16.msra.mxu0 %v1961_v21  ;;  %v2018_v1 = vld [vmem:[%s2622_s0 + $0xfc] ss:$20 sps:$4 sm:$0xff]   ;;  %v2025_v5 = vld [vmem:[%s2622_s0 + $0x124] ss:$20 sps:$4 sm:$0xff]   ;;  %v2027_v8 = vld [vmem:[%s2622_s0 + $0x120] ss:$20 sps:$4 sm:$0xff]  }
  0x18   :  { %1647 = vmatprep.subr.bf16.mxu0 %v1964_v24  ;;  %v2016_v2 = vld [vmem:[%s2622_s0 + $0xf0] ss:$20 sps:$4 sm:$0xff]   ;;  %v2023_v6 = vld [vmem:[%s2622_s0 + $0x118] ss:$20 sps:$4 sm:$0xff]   ;;  %v2030_v10 = vld [vmem:[%s2622_s0 + $0x60] ss:$20 sps:$4 sm:$0xff]  }
  0x19   :  { %1710 = vmatpush3.bf16.msra.mxu1 %v1963_v23  ;;  %v2021_v3 = vld [vmem:[%s2622_s0 + $0x11c] ss:$20 sps:$4 sm:$0xff]   ;;  %v2029_v9 = vld [vmem:[%s2622_s0 + $0x38] ss:$20 sps:$4 sm:$0xff]   ;;  %v2034_v14 = vld [vmem:[%s2622_s0 + $0x100] ss:$20 sps:$4 sm:$0xff]  }
  0x1a   :  { %1711 = vmatprep.subr.bf16.mxu1 %v1966_v26  ;;  %v2028_v7 = vld [vmem:[%s2622_s0 + $0x10] ss:$20 sps:$4 sm:$0xff]   ;;  %v2031_v11 = vld [vmem:[%s2622_s0 + $0x88] ss:$20 sps:$4 sm:$0xff]   ;;  %v2033_v13 = vld [vmem:[%s2622_s0 + $0xd8] ss:$20 sps:$4 sm:$0xff]  }
  0x1b   :  { %1648 = vmatpush3.bf16.msra.mxu0 %v1965_v25  ;;  %v2032_v12 = vld [vmem:[%s2622_s0 + $0xb0] ss:$20 sps:$4 sm:$0xff]   ;;  %v2035_v15 = vld [vmem:[%s2622_s0 + $0x128] ss:$20 sps:$4 sm:$0xff]   ;;  %v2468_v25 = vld [vmem:[%s2624_s2] ss:$0 sm:$0xff] }
  0x1c   :  { %1649 = vmatprep.subr.bf16.mxu0 %v1968_v28  ;;  %v2036_v16 = vld [vmem:[%s2623_s3] sm:$0xff]   ;;  %v2037_v17 = vld [vmem:[%s2623_s3 + $0x8] sm:$0xff]   ;;  %v2038_v18 = vld [vmem:[%s2623_s3 + $0x10] sm:$0xff]  }
  0x1d   :  { %1712 = vmatpush3.bf16.msra.mxu1 %v1967_v27  ;;  %v2039_v19 = vld [vmem:[%s2623_s3 + $0x18] sm:$0xff]   ;;  %v2040_v20 = vld [vmem:[%s2623_s3 + $0x20] sm:$0xff]   ;;  %v2041_v21 = vld [vmem:[%s2623_s3 + $0x28] sm:$0xff]  }
  0x1e   :  { %1713 = vmatprep.subr.bf16.mxu1 %v1970_v30  ;;  %v2042_v22 = vld [vmem:[%s2623_s3 + $0x30] sm:$0xff]   ;;  %v2043_v23 = vld [vmem:[%s2623_s3 + $0x38] sm:$0xff]  }
  0x1f   :  { %1650 = vmatpush3.bf16.msra.mxu0 %v1969_v29 }
  0x20   :  { %1820 = vmatprep.subr.bf16.mxu0 %v1975_v34 }
  0x21   :  { %1714 = vmatpush3.bf16.msra.mxu1 %v1974_v33 }
  0x22   :  { %650 = vmatmul.mubr.bf16.vlgmr.msra.gmra.mrb[0].mxu0 %v1971_v31  ;;  %1852 = vmatprep.subr.bf16.mxu1 %v2036_v16 }
  0x23   :  { %1821 = vmatpush3.bf16.msra.mxu0 %v1975_v34  ;;  %657 = vmatprep.mubr.bf16.mxu0 %v1979_v37 }
  0x24   :  { %747 = vmatmul.mubr.bf16.vlgmr.msra.gmra.mrb[0].mxu1 %v1976_v35  ;;  %1822 = vmatprep.subr.bf16.mxu0 %v1982_v38 }
  0x25   :  { %754 = vmatprep.mubr.bf16.mxu1 %v1983_v39  ;;  %1853 = vmatpush3.bf16.msra.mxu1 %v2036_v16 }
  0x26   :  { %1854 = vmatprep.subr.bf16.mxu1 %v2037_v17 }
  0x27   :  { %1823 = vmatpush3.bf16.msra.mxu0 %v1982_v38 }
  0x28   :  { %1824 = vmatprep.subr.bf16.mxu0 %v1989_v42 }
  0x29   :  { %1855 = vmatpush3.bf16.msra.mxu1 %v2037_v17 }
  0x2a   :  { %658 = vmatmul.mubr.bf16.gmra.mrb[4].mxu0 %v1981_v40  ;;  %1856 = vmatprep.subr.bf16.mxu1 %v2038_v18 }
  0x2b   :  { %665 = vmatprep.mubr.bf16.mxu0 %v1986_v41  ;;  %1825 = vmatpush3.bf16.msra.mxu0 %v1989_v42 }
  0x2c   :  { %755 = vmatmul.mubr.bf16.gmra.mrb[4].mxu1 %v1985_v43  ;;  %1826 = vmatprep.subr.bf16.mxu0 %v1996_v45 }
  0x2d   :  { %762 = vmatprep.mubr.bf16.mxu1 %v1990_v44  ;;  %1857 = vmatpush3.bf16.msra.mxu1 %v2038_v18 }
  0x2e   :  { %1858 = vmatprep.subr.bf16.mxu1 %v2039_v19 }
  0x2f   :  { %1827 = vmatpush3.bf16.msra.mxu0 %v1996_v45 }
  0x30   :  { %1828 = vmatprep.subr.bf16.mxu0 %v2003_v48 }
  0x31   :  { %1859 = vmatpush3.bf16.msra.mxu1 %v2039_v19 }
  0x32   :  { %666 = vmatmul.mubr.bf16.gmra.mrb[8].mxu0 %v1988_v46  ;;  %1860 = vmatprep.subr.bf16.mxu1 %v2040_v20 }
  0x33   :  { %673 = vmatprep.mubr.bf16.mxu0 %v1993_v47  ;;  %1829 = vmatpush3.bf16.msra.mxu0 %v2003_v48 }
  0x34   :  { %763 = vmatmul.mubr.bf16.gmra.mrb[8].mxu1 %v1992_v49  ;;  %1830 = vmatprep.subr.bf16.mxu0 %v2010_v51 }
  0x35   :  { %770 = vmatprep.mubr.bf16.mxu1 %v1997_v50  ;;  %1861 = vmatpush3.bf16.msra.mxu1 %v2040_v20 }
  0x36   :  { %1862 = vmatprep.subr.bf16.mxu1 %v2041_v21 }
  0x37   :  { %1831 = vmatpush3.bf16.msra.mxu0 %v2010_v51 }
  0x38   :  { %1832 = vmatprep.subr.bf16.mxu0 %v2017_v54 }
  0x39   :  { %1863 = vmatpush3.bf16.msra.mxu1 %v2041_v21 }
  0x3a   :  { %674 = vmatmul.mubr.bf16.gmra.mrb[12].mxu0 %v1995_v52  ;;  %1864 = vmatprep.subr.bf16.mxu1 %v2042_v22 }
  0x3b   :  { %681 = vmatprep.mubr.bf16.mxu0 %v2000_v53  ;;  %1833 = vmatpush3.bf16.msra.mxu0 %v2017_v54 }
  0x3c   :  { %771 = vmatmul.mubr.bf16.gmra.mrb[12].mxu1 %v1999_v55  ;;  %1834 = vmatprep.subr.bf16.mxu0 %v2024_v57 }
  0x3d   :  { %778 = vmatprep.mubr.bf16.mxu1 %v2004_v56  ;;  %1865 = vmatpush3.bf16.msra.mxu1 %v2042_v22 }
  0x3e   :  { %1866 = vmatprep.subr.bf16.mxu1 %v2043_v23 }
  0x3f   :  { %1835 = vmatpush3.bf16.msra.mxu0 %v2024_v57 }
  0x41   :  { %1867 = vmatpush3.bf16.msra.mxu1 %v2043_v23 }
  0x42   :  { %682 = vmatmul.mubr.bf16.gmra.mrb[16].mxu0 %v2002_v58 }
  0x43   :  { %689 = vmatprep.mubr.bf16.mxu0 %v2007_v59 }
  0x44   :  { %779 = vmatmul.mubr.bf16.gmra.mrb[16].mxu1 %v2006_v60 }
  0x45   :  { %786 = vmatprep.mubr.bf16.mxu1 %v2011_v61 }
  0x4a   :  { %690 = vmatmul.mubr.bf16.gmra.mrb[20].mxu0 %v2009_v62 }
  0x4b   :  { %697 = vmatprep.mubr.bf16.mxu0 %v2014_v63 }
  0x4c   :  { %787 = vmatmul.mubr.bf16.gmra.mrb[20].mxu1 %v2013_v0 }
  0x4d   :  { %794 = vmatprep.mubr.bf16.mxu1 %v2018_v1 }
  0x52   :  { %698 = vmatmul.mubr.bf16.gmra.mrb[24].mxu0 %v2016_v2 }
  0x53   :  { %705 = vmatprep.mubr.bf16.mxu0 %v2021_v3 }
  0x54   :  { %795 = vmatmul.mubr.bf16.gmra.mrb[24].mxu1 %v2020_v4 }
  0x55   :  { %802 = vmatprep.mubr.bf16.mxu1 %v2025_v5 }
  0x5a   :  { %706 = vmatmul.mubr.bf16.gmra.mrb[28].mxu0 %v2023_v6 }
  0x5b   :  { %1836 = vmatprep.mubr.bf16.mxu0 %v2028_v7 }
  0x5c   :  { %803 = vmatmul.mubr.bf16.gmra.mrb[28].mxu1 %v2027_v8 }
  0x62   :  { %1837 = vmatmul.mubr.bf16.vlgmr.msra.gmra.mrb[32].mxu0 %v2029_v9 }
  0x63   :  { %1840 = vmatprep.mubr.bf16.mxu0 %v2030_v10 }
  0x6a   :  { %1841 = vmatmul.mubr.bf16.gmra.mrb[36].mxu0 %v2031_v11 }
  0x6b   :  { %1844 = vmatprep.mubr.bf16.mxu0 %v2032_v12 }
  0x72   :  { %1845 = vmatmul.mubr.bf16.gmra.mrb[40].mxu0 %v2033_v13 }
  0x73   :  { %1848 = vmatprep.mubr.bf16.mxu0 %v2034_v14 }
  0x7a   :  { %1849 = vmatmul.mubr.bf16.gmra.mrb[44].mxu0 %v2035_v15 }
  0xf5   :  { %v1651_v24 = vpop.f32.mrb[0].mxu0 }
  0xf6   :  { %v1652_v26 = vpop.f32.mrb[1].mxu0 }
  0xf7   :  { %v1653_v27 = vadd.f32 %v1652_v26, %v1651_v24  ;;  %v1654_v28 = vpop.f32.mrb[2].mxu0  ;;  %v1715_v29 = vpop.f32.mrb[0].mxu1 }
  0xf8   :  { %v1655_v30 = vpop.f32.mrb[3].mxu0  ;;  %v1716_v33 = vpop.f32.mrb[1].mxu1 }
  0xf9   :  { %v652_v31 = vadd.f32 %v1653_v27, %v2468_v25  ;;  %v1656_v32 = vadd.f32 %v1655_v30, %v1654_v28  ;;  %v1717_v34 = vadd.f32 %v1716_v33, %v1715_v29  ;;  %v1718_v35 = vpop.f32.mrb[2].mxu1 }
  0xfa   :  { %v1719_v37 = vpop.f32.mrb[3].mxu1 }
  0xfb   :  { %v655_v36 = vadd.f32 %v1656_v32, %v2468_v25  ;;  %v1720_v38 = vadd.f32 %v1719_v37, %v1718_v35  ;;  %v2472_v39 = vadd.f32 %v1717_v34, %v652_v31 }
  0xfd   :  { %v1657_v40 = vpop.f32.mrb[4].mxu0  ;;  %v2474_v42 = vadd.f32 %v1720_v38, %v655_v36 }
  0xfe   :  { %v1658_v41 = vpop.f32.mrb[5].mxu0 }
  0xff   :  { %v1659_v43 = vadd.f32 %v1658_v41, %v1657_v40  ;;  %v1660_v44 = vpop.f32.mrb[6].mxu0  ;;  %v1721_v45 = vpop.f32.mrb[4].mxu1 }
 0x100   :  { %v1661_v46 = vpop.f32.mrb[7].mxu0  ;;  %v1722_v49 = vpop.f32.mrb[5].mxu1 }
 0x101   :  { %v660_v47 = vadd.f32 %v1659_v43, %v2468_v25  ;;  %v1662_v48 = vadd.f32 %v1661_v46, %v1660_v44  ;;  %v1723_v50 = vadd.f32 %v1722_v49, %v1721_v45  ;;  %v1724_v51 = vpop.f32.mrb[6].mxu1 }
 0x102   :  { %v1725_v53 = vpop.f32.mrb[7].mxu1 }
 0x103   :  { %v663_v52 = vadd.f32 %v1662_v48, %v2468_v25  ;;  %v1726_v54 = vadd.f32 %v1725_v53, %v1724_v51  ;;  %v2478_v55 = vadd.f32 %v1723_v50, %v660_v47 }
 0x105   :  { %v1663_v56 = vpop.f32.mrb[8].mxu0  ;;  %v2480_v58 = vadd.f32 %v1726_v54, %v663_v52 }
 0x106   :  { %v1664_v57 = vpop.f32.mrb[9].mxu0 }
 0x107   :  { %v1665_v59 = vadd.f32 %v1664_v57, %v1663_v56  ;;  %v1666_v60 = vpop.f32.mrb[10].mxu0  ;;  %v1727_v61 = vpop.f32.mrb[8].mxu1 }
 0x108   :  { %v1667_v62 = vpop.f32.mrb[11].mxu0  ;;  %v1728_v1 = vpop.f32.mrb[9].mxu1 }
 0x109   :  { %v668_v63 = vadd.f32 %v1665_v59, %v2468_v25  ;;  %v1668_v0 = vadd.f32 %v1667_v62, %v1666_v60  ;;  %v1729_v2 = vadd.f32 %v1728_v1, %v1727_v61  ;;  %v1730_v3 = vpop.f32.mrb[10].mxu1 }
 0x10a   :  { %v1731_v5 = vpop.f32.mrb[11].mxu1 }
 0x10b   :  { %v671_v4 = vadd.f32 %v1668_v0, %v2468_v25  ;;  %v1732_v6 = vadd.f32 %v1731_v5, %v1730_v3  ;;  %v2484_v7 = vadd.f32 %v1729_v2, %v668_v63 }
 0x10d   :  { %v1669_v8 = vpop.f32.mrb[12].mxu0  ;;  %v2486_v10 = vadd.f32 %v1732_v6, %v671_v4 }
 0x10e   :  { %v1670_v9 = vpop.f32.mrb[13].mxu0 }
 0x10f   :  { %v1671_v11 = vadd.f32 %v1670_v9, %v1669_v8  ;;  %v1672_v12 = vpop.f32.mrb[14].mxu0  ;;  %v1733_v13 = vpop.f32.mrb[12].mxu1 }
 0x110   :  { %v1673_v14 = vpop.f32.mrb[15].mxu0  ;;  %v1734_v17 = vpop.f32.mrb[13].mxu1 }
 0x111   :  { %v676_v15 = vadd.f32 %v1671_v11, %v2468_v25  ;;  %v1674_v16 = vadd.f32 %v1673_v14, %v1672_v12  ;;  %v1735_v18 = vadd.f32 %v1734_v17, %v1733_v13  ;;  %v1736_v19 = vpop.f32.mrb[14].mxu1 }
 0x112   :  { %v1737_v21 = vpop.f32.mrb[15].mxu1 }
 0x113   :  { %v679_v20 = vadd.f32 %v1674_v16, %v2468_v25  ;;  %v1738_v22 = vadd.f32 %v1737_v21, %v1736_v19  ;;  %v2490_v23 = vadd.f32 %v1735_v18, %v676_v15 }
 0x115   :  { %v1675_v24 = vpop.f32.mrb[16].mxu0  ;;  %v2492_v27 = vadd.f32 %v1738_v22, %v679_v20 }
 0x116   :  { %v1676_v26 = vpop.f32.mrb[17].mxu0 }
 0x117   :  { %v1677_v28 = vadd.f32 %v1676_v26, %v1675_v24  ;;  %v1678_v29 = vpop.f32.mrb[18].mxu0  ;;  %v1739_v30 = vpop.f32.mrb[16].mxu1 }
 0x118   :  { %v1679_v31 = vpop.f32.mrb[19].mxu0  ;;  %v1740_v34 = vpop.f32.mrb[17].mxu1 }
 0x119   :  { %v684_v32 = vadd.f32 %v1677_v28, %v2468_v25  ;;  %v1680_v33 = vadd.f32 %v1679_v31, %v1678_v29  ;;  %v1741_v35 = vadd.f32 %v1740_v34, %v1739_v30  ;;  %v1742_v36 = vpop.f32.mrb[18].mxu1 }
 0x11a   :  { %v1743_v38 = vpop.f32.mrb[19].mxu1 }
 0x11b   :  { %v687_v37 = vadd.f32 %v1680_v33, %v2468_v25  ;;  %v1744_v40 = vadd.f32 %v1743_v38, %v1742_v36  ;;  %v2496_v41 = vadd.f32 %v1741_v35, %v684_v32 }
 0x11d   :  { %v1681_v43 = vpop.f32.mrb[20].mxu0  ;;  %v2498_v45 = vadd.f32 %v1744_v40, %v687_v37 }
 0x11e   :  { %v1682_v44 = vpop.f32.mrb[21].mxu0 }
 0x11f   :  { %v1683_v46 = vadd.f32 %v1682_v44, %v1681_v43  ;;  %v1684_v47 = vpop.f32.mrb[22].mxu0  ;;  %v1745_v48 = vpop.f32.mrb[20].mxu1 }
 0x120   :  { %v1685_v49 = vpop.f32.mrb[23].mxu0  ;;  %v1746_v52 = vpop.f32.mrb[21].mxu1 }
 0x121   :  { %v692_v50 = vadd.f32 %v1683_v46, %v2468_v25  ;;  %v1686_v51 = vadd.f32 %v1685_v49, %v1684_v47  ;;  %v1747_v53 = vadd.f32 %v1746_v52, %v1745_v48  ;;  %v1748_v54 = vpop.f32.mrb[22].mxu1 }
 0x122   :  { %v1749_v57 = vpop.f32.mrb[23].mxu1 }
 0x123   :  { %v695_v56 = vadd.f32 %v1686_v51, %v2468_v25  ;;  %v1750_v59 = vadd.f32 %v1749_v57, %v1748_v54  ;;  %v789_v60 = vadd.f32 %v1747_v53, %v692_v50 }
 0x125   :  { %v1687_v61 = vpop.f32.mrb[24].mxu0  ;;  %v2502_v63 = vadd.f32 %v1750_v59, %v695_v56 }
 0x126   :  { %v1688_v62 = vpop.f32.mrb[25].mxu0 }
 0x127   :  { %v1689_v0 = vadd.f32 %v1688_v62, %v1687_v61  ;;  %v1690_v1 = vpop.f32.mrb[26].mxu0  ;;  %v1751_v2 = vpop.f32.mrb[24].mxu1 }
 0x128   :  { %v1691_v3 = vpop.f32.mrb[27].mxu0  ;;  %v1752_v6 = vpop.f32.mrb[25].mxu1 }
 0x129   :  { %v700_v4 = vadd.f32 %v1689_v0, %v2468_v25  ;;  %v1692_v5 = vadd.f32 %v1691_v3, %v1690_v1  ;;  %v1753_v8 = vadd.f32 %v1752_v6, %v1751_v2  ;;  %v1754_v9 = vpop.f32.mrb[26].mxu1 }
 0x12a   :  { %v1755_v12 = vpop.f32.mrb[27].mxu1 }
 0x12b   :  { %v703_v11 = vadd.f32 %v1692_v5, %v2468_v25  ;;  %v1756_v13 = vadd.f32 %v1755_v12, %v1754_v9  ;;  %v2506_v14 = vadd.f32 %v1753_v8, %v700_v4 }
 0x12d   :  { %v1693_v15 = vpop.f32.mrb[28].mxu0  ;;  %v2508_v17 = vadd.f32 %v1756_v13, %v703_v11 }
 0x12e   :  { %v1694_v16 = vpop.f32.mrb[29].mxu0 }
 0x12f   :  { %v1695_v18 = vadd.f32 %v1694_v16, %v1693_v15  ;;  %v1696_v19 = vpop.f32.mrb[30].mxu0  ;;  %v1757_v20 = vpop.f32.mrb[28].mxu1 }
 0x130   :  { %v1697_v21 = vpop.f32.mrb[31].mxu0  ;;  %v1758_v26 = vpop.f32.mrb[29].mxu1 }
 0x131   :  { %v708_v22 = vadd.f32 %v1695_v18, %v2468_v25  ;;  %v1698_v24 = vadd.f32 %v1697_v21, %v1696_v19  ;;  %v1759_v28 = vadd.f32 %v1758_v26, %v1757_v20  ;;  %v1760_v29 = vpop.f32.mrb[30].mxu1 }
 0x132   :  { %v1761_v31 = vpop.f32.mrb[31].mxu1 }
 0x133   :  { %v711_v30 = vadd.f32 %v1698_v24, %v2468_v25  ;;  %v1762_v32 = vadd.f32 %v1761_v31, %v1760_v29  ;;  %v805_v33 = vadd.f32 %v1759_v28, %v708_v22 }
 0x135   :  { %v1838_v34 = vpop.f32.mrb[32].mxu0  ;;  %v808_v37 = vadd.f32 %v1762_v32, %v711_v30 }
 0x136   :  { %v854_v35 = vadd.f32 %v1838_v34, %v2478_v55  ;;  %v845_v36 = vpop.f32.mrb[33].mxu0 }
 0x137   :  { %v846_v38 = vadd.f32 %v845_v36, %v2472_v39  ;;  %v1839_v40 = vpop.f32.mrb[34].mxu0 }
 0x138   :  { %v857_v43 = vadd.f32 %v1839_v40, %v2480_v58  ;;  %v848_v44 = vpop.f32.mrb[35].mxu0 }
 0x139   :  { %v849_v46 = vadd.f32 %v848_v44, %v2474_v42 }
 0x13a   :  { %v2516_v47 = vpack.c.bf16 %v857_v43, %v854_v35 }
 0x13b   :  { %v2518_v48 = vpack.c.bf16 %v849_v46, %v846_v38 }
 0x13c   :  { %v1594_v25 = vmul.bf16 3216621497, %v2516_v47 }
 0x13d   :  { %v1593_v49 = vmul.bf16 3216621497, %v2518_v48  ;;  %v1842_v50 = vpop.f32.mrb[36].mxu0 }
 0x13e   :  { %2052 = vpow.bf16 %v1594_v25  ;;  %v870_v55 = vadd.f32 %v1842_v50, %v2490_v23  ;;  %v861_v51 = vpop.f32.mrb[37].mxu0 }
 0x13f   :  { %2054 = vpow.bf16 %v1593_v49  ;;  %v862_v39 = vadd.f32 %v861_v51, %v2484_v7  ;;  %v1843_v58 = vpop.f32.mrb[38].mxu0 }
 0x140   :  { %v873_v52 = vadd.f32 %v1843_v58, %v2492_v27  ;;  %v864_v42 = vpop.f32.mrb[39].mxu0 }
 0x141   :  { %v865_v53 = vadd.f32 %v864_v42, %v2486_v10 }
 0x142   :  { %v2526_v54 = vpack.c.bf16 %v873_v52, %v870_v55 }
 0x143   :  { %v2528_v56 = vpack.c.bf16 %v865_v53, %v862_v39 }
 0x144   :  { %v1596_v57 = vmul.bf16 3216621497, %v2526_v54 }
 0x145   :  { %v1595_v59 = vmul.bf16 3216621497, %v2528_v56  ;;  %v1846_v61 = vpop.f32.mrb[40].mxu0 }
 0x146   :  { %2056 = vpow.bf16 %v1596_v57  ;;  %v886_v23 = vadd.f32 %v1846_v61, %v789_v60  ;;  %v877_v62 = vpop.f32.mrb[41].mxu0 }
 0x147   :  { %2058 = vpow.bf16 %v1595_v59  ;;  %v878_v7 = vadd.f32 %v877_v62, %v2496_v41  ;;  %v1847_v0 = vpop.f32.mrb[42].mxu0  ;;  %v2046_v62 = vld [vmem:[%s2625_s5 + $0x10] sm:$0xff]  }
 0x148   :  { %v889_v27 = vadd.f32 %v1847_v0, %v2502_v63  ;;  %v880_v1 = vpop.f32.mrb[43].mxu0  ;;  %v2048_v0 = vld [vmem:[%s2625_s5 + $0x20] sm:$0xff]  }
 0x149   :  { %v2053_v10 = vpop.eup %2052  ;;  %v881_v2 = vadd.f32 %v880_v1, %v2498_v45  ;;  %v2050_v1 = vld [vmem:[%s2625_s5 + $0x30] sm:$0xff]  }
 0x14a   :  { %v2055_v3 = vpop.eup %2054  ;;  %v949_v4 = vadd.bf16 1065369472, %v2053_v10  ;;  %v913_v5 = vpack.c.bf16 %v889_v27, %v886_v23  ;;  %v2045_v23 = vld [vmem:[%s2625_s5 + $0x8] sm:$0xff]   ;;  %v2051_v10 = vld [vmem:[%s2625_s5 + $0x38] sm:$0xff]  }
 0x14b   :  { %v948_v6 = vadd.bf16 1065369472, %v2055_v3  ;;  %v912_v8 = vpack.c.bf16 %v881_v2, %v878_v7  ;;  %v2047_v7 = vld [vmem:[%s2625_s5 + $0x18] sm:$0xff]   ;;  %v2049_v27 = vld [vmem:[%s2625_s5 + $0x28] sm:$0xff]   ;;  %v1601_v3 = vld [vmem:[%s2626_s4] ss:$0 sm:$0xff] }
 0x14c   :  { %2060 = vrcp.bf16 %v949_v4  ;;  %v1598_v9 = vmul.bf16 3216621497, %v913_v5 }
 0x14d   :  { %2062 = vrcp.bf16 %v948_v6  ;;  %v1597_v60 = vmul.bf16 3216621497, %v912_v8  ;;  %v1850_v11 = vpop.f32.mrb[44].mxu0 }
 0x14e   :  { %2064 = vpow.bf16 %v1598_v9  ;;  %v902_v12 = vadd.f32 %v1850_v11, %v805_v33  ;;  %v893_v41 = vpop.f32.mrb[45].mxu0 }
 0x14f   :  { %2066 = vpow.bf16 %v1597_v60  ;;  %v894_v63 = vadd.f32 %v893_v41, %v2506_v14  ;;  %v1851_v13 = vpop.f32.mrb[46].mxu0 }
 0x150   :  { %v905_v15 = vadd.f32 %v1851_v13, %v808_v37  ;;  %v896_v16 = vpop.f32.mrb[47].mxu0 }
 0x151   :  { %v2057_v45 = vpop.eup %2056  ;;  %v897_v18 = vadd.f32 %v896_v16, %v2508_v17 }
 0x152   :  { %v2059_v19 = vpop.eup %2058  ;;  %v951_v20 = vadd.bf16 1065369472, %v2057_v45  ;;  %v915_v21 = vpack.c.bf16 %v905_v15, %v902_v12 }
 0x153   :  { %v950_v22 = vadd.bf16 1065369472, %v2059_v19  ;;  %v914_v24 = vpack.c.bf16 %v897_v18, %v894_v63 }
 0x154   :  { %2068 = vrcp.bf16 %v951_v20  ;;  %v1600_v26 = vmul.bf16 3216621497, %v915_v21 }
 0x155   :  { %2070 = vrcp.bf16 %v950_v22  ;;  %v1599_v28 = vmul.bf16 3216621497, %v914_v24 }
 0x156   :  { %2072 = vpow.bf16 %v1600_v26 }
 0x157   :  { %v2061_v29 = vpop.eup %2060  ;;  %2074 = vpow.bf16 %v1599_v28 }
 0x158   :  { %v2063_v30 = vpop.eup %2062  ;;  %v959_v14 = vmul.bf16 1065369472, %v2061_v29 }
 0x159   :  { %v2065_v31 = vpop.eup %2064  ;;  %v957_v32 = vmul.bf16 1065369472, %v2063_v30 }
 0x15a   :  { %v2067_v33 = vpop.eup %2066  ;;  %v953_v34 = vadd.bf16 1065369472, %v2065_v31  ;;  %v973_v36 = vmul.bf16 %v959_v14, %v2516_v47 }
 0x15b   :  { %v952_v35 = vadd.bf16 1065369472, %v2067_v33  ;;  %v972_v17 = vmul.bf16 %v957_v32, %v2518_v48 }
 0x15c   :  { %2076 = vrcp.bf16 %v953_v34 }
 0x15d   :  { %2078 = vrcp.bf16 %v952_v35  ;;  %1868 = vmatprep.mubr.bf16.mxu1 %v972_v17 }
 0x15e   :  { %1869 = vmatmul.mubr.bf16.vlgmr.msra.gmra.mrb[32].mxu1 %v973_v36 }
 0x15f   :  { %v2069_v37 = vpop.eup %2068 }
 0x160   :  { %v2071_v38 = vpop.eup %2070  ;;  %v963_v40 = vmul.bf16 1065369472, %v2069_v37 }
 0x161   :  { %v2073_v43 = vpop.eup %2072  ;;  %v961_v44 = vmul.bf16 1065369472, %v2071_v38 }
 0x162   :  { %v2075_v46 = vpop.eup %2074  ;;  %v955_v25 = vadd.bf16 1065369472, %v2073_v43  ;;  %v975_v55 = vmul.bf16 %v963_v40, %v2526_v54  ;;  %v2044_v54 = vld [vmem:[%s2625_s5] sm:$0xff]  }
 0x163   :  { %v954_v49 = vadd.bf16 1065369472, %v2075_v46  ;;  %v974_v50 = vmul.bf16 %v961_v44, %v2528_v56  ;;  %1884 = vmatprep.subr.bf16.mxu0 %v2044_v54 }
 0x164   :  { %2080 = vrcp.bf16 %v955_v25  ;;  %1885 = vmatpush3.bf16.msra.mxu0 %v2044_v54 }
 0x165   :  { %2082 = vrcp.bf16 %v954_v49  ;;  %1872 = vmatprep.mubr.bf16.mxu1 %v974_v50  ;;  %1886 = vmatprep.subr.bf16.mxu0 %v2045_v23 }
 0x166   :  { %1873 = vmatmul.mubr.bf16.gmra.mrb[36].mxu1 %v975_v55 }
 0x167   :  { %v2077_v47 = vpop.eup %2076 }
 0x168   :  { %v2079_v48 = vpop.eup %2078  ;;  %v967_v51 = vmul.bf16 1065369472, %v2077_v47  ;;  %1887 = vmatpush3.bf16.msra.mxu0 %v2045_v23 }
 0x169   :  { %v965_v39 = vmul.bf16 1065369472, %v2079_v48  ;;  %1888 = vmatprep.subr.bf16.mxu0 %v2046_v62 }
 0x16a   :  { %v977_v52 = vmul.bf16 %v967_v51, %v913_v5 }
 0x16b   :  { %v976_v58 = vmul.bf16 %v965_v39, %v912_v8 }
 0x16c   :  { %1889 = vmatpush3.bf16.msra.mxu0 %v2046_v62 }
 0x16d   :  { %1876 = vmatprep.mubr.bf16.mxu1 %v976_v58  ;;  %1890 = vmatprep.subr.bf16.mxu0 %v2047_v7 }
 0x16e   :  { %1877 = vmatmul.mubr.bf16.gmra.mrb[40].mxu1 %v977_v52 }
 0x16f   :  { %v2081_v42 = vpop.eup %2080 }
 0x170   :  { %v2083_v53 = vpop.eup %2082  ;;  %v971_v57 = vmul.bf16 1065369472, %v2081_v42  ;;  %1891 = vmatpush3.bf16.msra.mxu0 %v2047_v7 }
 0x171   :  { %v969_v59 = vmul.bf16 1065369472, %v2083_v53  ;;  %1892 = vmatprep.subr.bf16.mxu0 %v2048_v0 }
 0x172   :  { %v979_v56 = vmul.bf16 %v971_v57, %v915_v21 }
 0x173   :  { %v978_v61 = vmul.bf16 %v969_v59, %v914_v24 }
 0x174   :  { %1893 = vmatpush3.bf16.msra.mxu0 %v2048_v0 }
 0x175   :  { %1880 = vmatprep.mubr.bf16.mxu1 %v978_v61  ;;  %1894 = vmatprep.subr.bf16.mxu0 %v2049_v27 }
 0x176   :  { %1881 = vmatmul.mubr.bf16.gmra.mrb[44].mxu1 %v979_v56 }
 0x178   :  { %1895 = vmatpush3.bf16.msra.mxu0 %v2049_v27 }
 0x179   :  { %1896 = vmatprep.subr.bf16.mxu0 %v2050_v1 }
 0x17c   :  { %1897 = vmatpush3.bf16.msra.mxu0 %v2050_v1 }
 0x17d   :  { %1898 = vmatprep.subr.bf16.mxu0 %v2051_v10 }
 0x180   :  { %1899 = vmatpush3.bf16.msra.mxu0 %v2051_v10 }
 0x231   :  { %v1870_v2 = vpop.f32.mrb[32].mxu1 }
 0x232   :  { %v1085_v4 = vpop.f32.mrb[33].mxu1  ;;  %v1094_v6 = vadd.f32 %v1870_v2, %v1601_v3 }
 0x233   :  { %v1871_v5 = vpop.f32.mrb[34].mxu1  ;;  %v1086_v60 = vadd.f32 %v1601_v3, %v1085_v4 }
 0x234   :  { %v1097_v8 = vadd.f32 %v1871_v5, %v1601_v3  ;;  %v1088_v9 = vpop.f32.mrb[35].mxu1 }
 0x235   :  { %v1089_v11 = vadd.f32 %v1601_v3, %v1088_v9 }
 0x236   :  { %v2568_v12 = vpack.c.bf16 %v1097_v8, %v1094_v6 }
 0x237   :  { %v2570_v41 = vpack.c.bf16 %v1089_v11, %v1086_v60 }
 0x238   :  { %v1611_v63 = vmul.bf16 3216621497, %v2568_v12 }
 0x239   :  { %v1610_v13 = vmul.bf16 3216621497, %v2570_v41  ;;  %v1874_v15 = vpop.f32.mrb[36].mxu1 }
 0x23a   :  { %2084 = vpow.bf16 %v1611_v63  ;;  %v1101_v16 = vpop.f32.mrb[37].mxu1  ;;  %v1110_v18 = vadd.f32 %v1874_v15, %v1601_v3 }
 0x23b   :  { %2086 = vpow.bf16 %v1610_v13  ;;  %v1875_v45 = vpop.f32.mrb[38].mxu1  ;;  %v1102_v21 = vadd.f32 %v1601_v3, %v1101_v16 }
 0x23c   :  { %v1113_v19 = vadd.f32 %v1875_v45, %v1601_v3  ;;  %v1104_v20 = vpop.f32.mrb[39].mxu1 }
 0x23d   :  { %v1105_v22 = vadd.f32 %v1601_v3, %v1104_v20 }
 0x23e   :  { %v2574_v24 = vpack.c.bf16 %v1113_v19, %v1110_v18 }
 0x23f   :  { %v2576_v26 = vpack.c.bf16 %v1105_v22, %v1102_v21 }
 0x240   :  { %v1613_v28 = vmul.bf16 3216621497, %v2574_v24 }
 0x241   :  { %v1612_v29 = vmul.bf16 3216621497, %v2576_v26  ;;  %v1878_v30 = vpop.f32.mrb[40].mxu1 }
 0x242   :  { %2088 = vpow.bf16 %v1613_v28  ;;  %v1117_v14 = vpop.f32.mrb[41].mxu1  ;;  %v1126_v32 = vadd.f32 %v1878_v30, %v1601_v3 }
 0x243   :  { %2090 = vpow.bf16 %v1612_v29  ;;  %v1879_v31 = vpop.f32.mrb[42].mxu1  ;;  %v1118_v17 = vadd.f32 %v1601_v3, %v1117_v14  ;;  %v2150_v14 = vmov 0  }
 0x244   :  { %v1129_v33 = vadd.f32 %v1879_v31, %v1601_v3  ;;  %v1120_v34 = vpop.f32.mrb[43].mxu1  ;;  %1939 = vset.pattern.permute.xlu0 %v2150_v14  ;;  %v1461_v31 = vld [vmem:[%s2627_s8] sm:$0xff] }
 0x245   :  { %v2085_v35 = vpop.eup %2084  ;;  %v1121_v36 = vadd.f32 %v1601_v3, %v1120_v34  ;;  %1464 = vperm.xlu0 %1939, %v1461_v31  }
 0x246   :  { %v2087_v37 = vpop.eup %2086  ;;  %v1189_v38 = vadd.bf16 1065369472, %v2085_v35  ;;  %v1153_v40 = vpack.c.bf16 %v1129_v33, %v1126_v32  ;;  %v1618_v33 = vld [vmem:[%s2628_s6] ss:$0 sm:$0xff] }
 0x247   :  { %v1188_v43 = vadd.bf16 1065369472, %v2087_v37  ;;  %v1152_v44 = vpack.c.bf16 %v1121_v36, %v1118_v17 }
 0x248   :  { %2092 = vrcp.bf16 %v1189_v38  ;;  %v1615_v46 = vmul.bf16 3216621497, %v1153_v40 }
 0x249   :  { %2094 = vrcp.bf16 %v1188_v43  ;;  %v1614_v25 = vmul.bf16 3216621497, %v1152_v44  ;;  %v1882_v49 = vpop.f32.mrb[44].mxu1 }
 0x24a   :  { %2096 = vpow.bf16 %v1615_v46  ;;  %v1133_v50 = vpop.f32.mrb[45].mxu1  ;;  %v1142_v47 = vadd.f32 %v1882_v49, %v1601_v3 }
 0x24b   :  { %2098 = vpow.bf16 %v1614_v25  ;;  %v1883_v55 = vpop.f32.mrb[46].mxu1  ;;  %v1134_v58 = vadd.f32 %v1601_v3, %v1133_v50 }
 0x24c   :  { %v1145_v48 = vadd.f32 %v1883_v55, %v1601_v3  ;;  %v1136_v51 = vpop.f32.mrb[47].mxu1 }
 0x24d   :  { %v2089_v39 = vpop.eup %2088  ;;  %v1137_v52 = vadd.f32 %v1601_v3, %v1136_v51 }
 0x24e   :  { %v2091_v42 = vpop.eup %2090  ;;  %v1191_v53 = vadd.bf16 1065369472, %v2089_v39  ;;  %v1155_v57 = vpack.c.bf16 %v1145_v48, %v1142_v47 }
 0x24f   :  { %v1190_v59 = vadd.bf16 1065369472, %v2091_v42  ;;  %v1154_v61 = vpack.c.bf16 %v1137_v52, %v1134_v58 }
 0x250   :  { %2100 = vrcp.bf16 %v1191_v53  ;;  %v1617_v56 = vmul.bf16 3216621497, %v1155_v57 }
 0x251   :  { %2102 = vrcp.bf16 %v1190_v59  ;;  %v1616_v54 = vmul.bf16 3216621497, %v1154_v61 }
 0x252   :  { %2104 = vpow.bf16 %v1617_v56 }
 0x253   :  { %v2093_v23 = vpop.eup %2092  ;;  %2106 = vpow.bf16 %v1616_v54 }
 0x254   :  { %v2095_v62 = vpop.eup %2094  ;;  %v1199_v7 = vmul.bf16 1065369472, %v2093_v23 }
 0x255   :  { %v2097_v0 = vpop.eup %2096  ;;  %v1197_v27 = vmul.bf16 1065369472, %v2095_v62 }
 0x256   :  { %v2099_v1 = vpop.eup %2098  ;;  %v1193_v10 = vadd.bf16 1065369472, %v2097_v0  ;;  %v1213_v4 = vmul.bf16 %v1199_v7, %v2568_v12 }
 0x257   :  { %v1192_v2 = vadd.bf16 1065369472, %v2099_v1  ;;  %v1212_v3 = vmul.bf16 %v1197_v27, %v2570_v41 }
 0x258   :  { %2108 = vrcp.bf16 %v1193_v10 }
 0x259   :  { %2110 = vrcp.bf16 %v1192_v2  ;;  %1900 = vmatprep.mubr.bf16.mxu0 %v1212_v3 }
 0x25a   :  { %1901 = vmatmul.mubr.bf16.vlgmr.msra.gmra.mrb[48].mxu0 %v1213_v4 }
 0x25b   :  { %v2101_v5 = vpop.eup %2100 }
 0x25c   :  { %v2103_v6 = vpop.eup %2102  ;;  %v1203_v8 = vmul.bf16 1065369472, %v2101_v5 }
 0x25d   :  { %v2105_v9 = vpop.eup %2104  ;;  %v1201_v60 = vmul.bf16 1065369472, %v2103_v6 }
 0x25e   :  { %v2107_v11 = vpop.eup %2106  ;;  %v1195_v63 = vadd.bf16 1065369472, %v2105_v9  ;;  %v1215_v16 = vmul.bf16 %v1203_v8, %v2574_v24  ;;  %v2148_v24 = vmov 0.0  }
 0x25f   :  { %v1194_v13 = vadd.bf16 1065369472, %v2107_v11  ;;  %v1214_v15 = vmul.bf16 %v1201_v60, %v2576_v26  ;;  %1916 = vmatprep.subr.bf16.mxu1 %v2148_v24  ;;  %1932 = vmatprep.mubr.msk.bf16.mxu1 %vm2149_vm0, %v2148_v24 }
 0x260   :  { %2112 = vrcp.bf16 %v1195_v63 }
 0x261   :  { %2114 = vrcp.bf16 %v1194_v13  ;;  %1904 = vmatprep.mubr.bf16.mxu0 %v1214_v15 }
 0x262   :  { %1905 = vmatmul.mubr.bf16.gmra.mrb[52].mxu0 %v1215_v16 }
 0x263   :  { %v2109_v12 = vpop.eup %2108 }
 0x264   :  { %v2111_v41 = vpop.eup %2110  ;;  %v1207_v45 = vmul.bf16 1065369472, %v2109_v12 }
 0x265   :  { %v1205_v18 = vmul.bf16 1065369472, %v2111_v41 }
 0x266   :  { %v1217_v20 = vmul.bf16 %v1207_v45, %v1153_v40 }
 0x267   :  { %v1216_v19 = vmul.bf16 %v1205_v18, %v1152_v44 }
 0x269   :  { %1908 = vmatprep.mubr.bf16.mxu0 %v1216_v19 }
 0x26a   :  { %1909 = vmatmul.mubr.bf16.gmra.mrb[56].mxu0 %v1217_v20 }
 0x26b   :  { %v2113_v21 = vpop.eup %2112 }
 0x26c   :  { %v2115_v22 = vpop.eup %2114  ;;  %v1211_v28 = vmul.bf16 1065369472, %v2113_v21 }
 0x26d   :  { %v1209_v29 = vmul.bf16 1065369472, %v2115_v22 }
 0x26e   :  { %v1219_v26 = vmul.bf16 %v1211_v28, %v1155_v57 }
 0x26f   :  { %v1218_v30 = vmul.bf16 %v1209_v29, %v1154_v61 }
 0x271   :  { %1912 = vmatprep.mubr.bf16.mxu0 %v1218_v30 }
 0x272   :  { %1913 = vmatmul.mubr.bf16.gmra.mrb[60].mxu0 %v1219_v26 }
 0x32d   :  { %v1902_v32 = vpop.f32.mrb[48].mxu0 }
 0x32e   :  { %v1325_v34 = vpop.f32.mrb[49].mxu0  ;;  %v1334_v17 = vadd.f32 %v1902_v32, %v1618_v33 }
 0x32f   :  { %v1903_v35 = vpop.f32.mrb[50].mxu0  ;;  %v1326_v38 = vadd.f32 %v1618_v33, %v1325_v34 }
 0x330   :  { %v1337_v36 = vadd.f32 %v1903_v35, %v1618_v33  ;;  %v1328_v37 = vpop.f32.mrb[51].mxu0 }
 0x331   :  { %v1329_v40 = vadd.f32 %v1618_v33, %v1328_v37 }
 0x332   :  { %v2592_v43 = vpack.c.bf16 %v1337_v36, %v1334_v17 }
 0x333   :  { %v1388_v44 = vpack.c.bf16 %v1329_v40, %v1326_v38 }
 0x334   :  { %v1628_v46 = vmul.bf16 3216621497, %v2592_v43 }
 0x335   :  { %v1627_v25 = vmul.bf16 3216621497, %v1388_v44  ;;  %v1906_v49 = vpop.f32.mrb[52].mxu0 }
 0x336   :  { %2116 = vpow.bf16 %v1628_v46  ;;  %v1341_v50 = vpop.f32.mrb[53].mxu0  ;;  %v1350_v47 = vadd.f32 %v1906_v49, %v1618_v33 }
 0x337   :  { %2118 = vpow.bf16 %v1627_v25  ;;  %v1907_v55 = vpop.f32.mrb[54].mxu0  ;;  %v1342_v39 = vadd.f32 %v1618_v33, %v1341_v50 }
 0x338   :  { %v1353_v48 = vadd.f32 %v1907_v55, %v1618_v33  ;;  %v1344_v51 = vpop.f32.mrb[55].mxu0 }
 0x339   :  { %v1345_v58 = vadd.f32 %v1618_v33, %v1344_v51 }
 0x33a   :  { %v2595_v52 = vpack.c.bf16 %v1353_v48, %v1350_v47 }
 0x33b   :  { %v1390_v42 = vpack.c.bf16 %v1345_v58, %v1342_v39 }
 0x33c   :  { %v1630_v2 = vmul.bf16 3216621497, %v2595_v52 }
 0x33d   :  { %v1629_v53 = vmul.bf16 3216621497, %v1390_v42  ;;  %v1910_v57 = vpop.f32.mrb[56].mxu0 }
 0x33e   :  { %v1357_v59 = vpop.f32.mrb[57].mxu0  ;;  %v1366_v56 = vadd.f32 %v1910_v57, %v1618_v33 }
 0x33f   :  { %2120 = vpow.bf16 %v1629_v53  ;;  %v1911_v61 = vpop.f32.mrb[58].mxu0  ;;  %v1358_v7 = vadd.f32 %v1618_v33, %v1357_v59 }
 0x340   :  { %v1369_v54 = vadd.f32 %v1911_v61, %v1618_v33  ;;  %v1360_v23 = vpop.f32.mrb[59].mxu0  ;;  %v1460_v61 = vld [vmem:[%s2629_s7] sm:$0xf] }
 0x341   :  { %v2117_v62 = vpop.eup %2116  ;;  %v1361_v0 = vadd.f32 %v1618_v33, %v1360_v23 }
 0x342   :  { %v2119_v27 = vpop.eup %2118  ;;  %v2597_v1 = vpack.c.bf16 %v1369_v54, %v1366_v56  ;;  %v1429_v4 = vadd.bf16 1065369472, %v2117_v62  ;;  %v1465_v56 = vpop.permute.xlu0 %1464 }
 0x343   :  { %v1428_v10 = vadd.bf16 1065369472, %v2119_v27  ;;  %v1392_v3 = vpack.c.bf16 %v1361_v0, %v1358_v7 }
 0x344   :  { %v1632_v22 = vmul.bf16 3216621497, %v2597_v1 }
 0x345   :  { %2122 = vrcp.bf16 %v1428_v10  ;;  %v1914_v5 = vpop.f32.mrb[60].mxu0  ;;  %v1631_v12 = vmul.bf16 3216621497, %v1392_v3 }
 0x346   :  { %v1373_v6 = vpop.f32.mrb[61].mxu0  ;;  %2124 = vpow.bf16 %v1630_v2  ;;  %v1382_v9 = vadd.f32 %v1914_v5, %v1618_v33 }
 0x347   :  { %v1915_v8 = vpop.f32.mrb[62].mxu0  ;;  %2126 = vrcp.bf16 %v1429_v4  ;;  %v1374_v63 = vadd.f32 %v1618_v33, %v1373_v6 }
 0x348   :  { %v1385_v60 = vadd.f32 %v1915_v8, %v1618_v33  ;;  %v1376_v11 = vpop.f32.mrb[63].mxu0  ;;  %2128 = vpow.bf16 %v1631_v12 }
 0x349   :  { %v1377_v13 = vadd.f32 %v1618_v33, %v1376_v11 }
 0x34a   :  { %v2121_v15 = vpop.eup %2120  ;;  %v2600_v16 = vpack.c.bf16 %v1385_v60, %v1382_v9 }
 0x34b   :  { %v1394_v41 = vpack.c.bf16 %v1377_v13, %v1374_v63  ;;  %v1430_v45 = vadd.bf16 1065369472, %v2121_v15 }
 0x34c   :  { %v1634_v36 = vmul.bf16 3216621497, %v2600_v16 }
 0x34d   :  { %2130 = vrcp.bf16 %v1430_v45  ;;  %v1633_v31 = vmul.bf16 3216621497, %v1394_v41 }
 0x34e   :  { %2132 = vpow.bf16 %v1632_v22 }
 0x350   :  { %v2123_v18 = vpop.eup %2122 }
 0x351   :  { %v1437_v19 = vmul.bf16 1065369472, %v2123_v18  ;;  %v2125_v20 = vpop.eup %2124 }
 0x352   :  { %v2127_v28 = vpop.eup %2126  ;;  %v1431_v29 = vadd.bf16 1065369472, %v2125_v20 }
 0x353   :  { %v1452_v21 = vmul.bf16 %v1437_v19, %v1388_v44  ;;  %v1439_v30 = vmul.bf16 1065369472, %v2127_v28  ;;  %v2129_v26 = vpop.eup %2128 }
 0x354   :  { %2134 = vrcp.bf16 %v1431_v29  ;;  %v1432_v33 = vadd.bf16 1065369472, %v2129_v26 }
 0x355   :  { %1917 = vmatpush3.bf16.xpose.msra.mxu1 %v1452_v21  ;;  %v1453_v14 = vmul.bf16 %v1439_v30, %v2592_v43  ;;  %2136 = vpow.bf16 %v1633_v31 }
 0x356   :  { %1918 = vmatprep.subr.bf16.mxu1 %v2148_v24  ;;  %2138 = vrcp.bf16 %v1432_v33 }
 0x357   :  { %2140 = vpow.bf16 %v1634_v36 }
 0x358   :  { %v2131_v32 = vpop.eup %2130 }
 0x359   :  { %v1441_v34 = vmul.bf16 1065369472, %v2131_v32  ;;  %v2133_v35 = vpop.eup %2132 }
 0x35a   :  { %v1433_v38 = vadd.bf16 1065369472, %v2133_v35 }
 0x35b   :  { %v1454_v17 = vmul.bf16 %v1441_v34, %v1390_v42 }
 0x35c   :  { %2142 = vrcp.bf16 %v1433_v38 }
 0x35d   :  { %1919 = vmatpush3.bf16.xpose.msra.mxu1 %v1453_v14 }
 0x35e   :  { %1920 = vmatprep.subr.bf16.mxu1 %v2148_v24 }
 0x35f   :  { %v2135_v37 = vpop.eup %2134 }
 0x360   :  { %v1443_v40 = vmul.bf16 1065369472, %v2135_v37  ;;  %v2137_v43 = vpop.eup %2136 }
 0x361   :  { %v2139_v46 = vpop.eup %2138  ;;  %v1434_v25 = vadd.bf16 1065369472, %v2137_v43 }
 0x362   :  { %v1455_v44 = vmul.bf16 %v1443_v40, %v2595_v52  ;;  %v1445_v49 = vmul.bf16 1065369472, %v2139_v46  ;;  %v2141_v50 = vpop.eup %2140 }
 0x363   :  { %2144 = vrcp.bf16 %v1434_v25  ;;  %v1435_v48 = vadd.bf16 1065369472, %v2141_v50 }
 0x364   :  { %v1456_v55 = vmul.bf16 %v1445_v49, %v1392_v3 }
 0x365   :  { %1921 = vmatpush3.bf16.xpose.msra.mxu1 %v1454_v17  ;;  %2146 = vrcp.bf16 %v1435_v48 }
 0x366   :  { %1922 = vmatprep.subr.bf16.mxu1 %v2148_v24 }
 0x367   :  { %v2143_v47 = vpop.eup %2142 }
 0x368   :  { %v1447_v51 = vmul.bf16 1065369472, %v2143_v47 }
 0x36a   :  { %v1457_v39 = vmul.bf16 %v1447_v51, %v2597_v1 }
 0x36d   :  { %1923 = vmatpush3.bf16.xpose.msra.mxu1 %v1455_v44 }
 0x36e   :  { %1924 = vmatprep.subr.bf16.mxu1 %v2148_v24  ;;  %v2145_v58 = vpop.eup %2144 }
 0x36f   :  { %v1449_v52 = vmul.bf16 1065369472, %v2145_v58 }
 0x370   :  { %v2147_v53 = vpop.eup %2146 }
 0x371   :  { %v1458_v42 = vmul.bf16 %v1449_v52, %v1394_v41  ;;  %v1451_v57 = vmul.bf16 1065369472, %v2147_v53 }
 0x373   :  { %v1459_v59 = vmul.bf16 %v1451_v57, %v2600_v16 }
 0x375   :  { %1925 = vmatpush3.bf16.xpose.msra.mxu1 %v1456_v55 }
 0x376   :  { %1926 = vmatprep.subr.bf16.mxu1 %v2148_v24 }
 0x37d   :  { %1927 = vmatpush3.bf16.xpose.msra.mxu1 %v1457_v39 }
 0x37e   :  { %1928 = vmatprep.subr.bf16.mxu1 %v2148_v24 }
 0x385   :  { %1929 = vmatpush3.bf16.xpose.msra.mxu1 %v1458_v42 }
 0x386   :  { %1930 = vmatprep.subr.bf16.mxu1 %v2148_v24 }
 0x38d   :  { %1931 = vmatpush3.bf16.xpose.msra.mxu1 %v1459_v59 }
 0x394   :  { %1933 = vmatmul.mubr.bf16.vlgmr.msra.gmra.mrb[48].mxu1 %v1460_v61 }
 0x467   :  { %v1501_v54 = vpop.f32.mrb[48].mxu1 }
 0x468   :  { %v1502_v23 = vadd.f32 %v1501_v54, %v1465_v56  ;;  %v1934_v62 = vpop.f32.mrb[49].mxu1 }
 0x469   :  { %v1504_v7 = vpop.f32.mrb[50].mxu1 }
 0x46a   :  { %1507 = vst [vmem:[%s2630_s9] sm:$0xff] %v1502_v23  ;;  %v1935_v0 = vpop.f32.mrb[51].mxu1 }

</bundles_post_ra>
